<compile_context>
chip_gen: v7x
topology: tpu7x:2x2x1
jax: 0.10.0
libtpu: 0.0.40
codegen_flags: <defaults>
</compile_context>

<pallas_src>
import functools

import jax
import jax.numpy as jnp
from jax import lax
from jax.experimental import pallas as pl
from jax.experimental.pallas import tpu as pltpu

# ----------------- hyperparameters (from the PyTorch script) -----------------
n_embd = 128
head_size = 32           # n_embd // num_heads in the surrounding model
dropout = 0.2            # nn.Dropout -> identity at inference
NEG_INF = -1e9           # additive mask value (finite: no -inf - -inf NaN risk)


# =============================== fused kernel ===============================

def _head_kernel(*refs, B, T, hs, use_mask, causal):
    """Fused single-head attention, one kernel invocation for the whole batch.

    refs (use_mask=True):  x(B,T,C) f32, wq/wk/wv(C,hs) bf16, mask(T,T) f32, o(B,T,hs)
    refs (use_mask=False): x(B,T,C) f32, wq/wk/wv(C,hs) bf16, o(B,T,hs)
    """
    if use_mask:
        x_ref, wq_ref, wk_ref, wv_ref, mask_ref, o_ref = refs
    else:
        x_ref, wq_ref, wk_ref, wv_ref, o_ref = refs
        mask_ref = None

    C = x_ref.shape[-1]

    # Flatten (B,T,C)->(B*T,C) (leading-dim collapse: free) and feed bf16 to the MXU.
    x = x_ref[...].reshape(B * T, C).astype(jnp.bfloat16)

    # Three lane-aligned projections; f32 accumulation.  The C**-0.5 scale is
    # already folded into wq, so scores come out pre-scaled.
    q = jnp.dot(x, wq_ref[...], preferred_element_type=jnp.float32)   # (B*T, hs)
    k = jnp.dot(x, wk_ref[...], preferred_element_type=jnp.float32)
    v = jnp.dot(x, wv_ref[...], preferred_element_type=jnp.float32)

    qb = q.reshape(B, T, hs).astype(jnp.bfloat16)
    kb = k.reshape(B, T, hs).astype(jnp.bfloat16)
    vb = v.reshape(B, T, hs).astype(jnp.bfloat16)

    # Attention scores (already scaled), f32.
    wei = jnp.einsum("bqh,bkh->bqk", qb, kb,
                     preferred_element_type=jnp.float32)              # (B, T, T)

    if use_mask:
        wei = wei + mask_ref[...][None, :, :]                         # additive 0 / -1e9
    elif causal:
        row = lax.broadcasted_iota(jnp.int32, (T, T), 0)
        col = lax.broadcasted_iota(jnp.int32, (T, T), 1)
        wei = wei + jnp.where(row >= col, 0.0, NEG_INF)[None, :, :]   # generated in-kernel

    # Numerically-stable softmax in f32; reciprocal on the EUP slot.
    wei = wei - jnp.max(wei, axis=-1, keepdims=True)
    p = jnp.exp(wei)
    p = p * pl.reciprocal(jnp.sum(p, axis=-1, keepdims=True), approx=True)
    # TODO(synk): nn.Dropout(0.2) on attention weights omitted (eval-mode forward).

    out = jnp.einsum("bqk,bkh->bqh", p.astype(jnp.bfloat16), vb,
                     preferred_element_type=jnp.float32)              # (B, T, hs)
    o_ref[...] = out.astype(o_ref.dtype)


# ========================= one-time (offline) preparation =========================

def prepare_head_weights(wq, wk, wv, n_embd_):
    """Fold the C**-0.5 scale into Wq and cast to bf16. Do once per model, not per call."""
    scale = float(n_embd_) ** -0.5
    return ((wq.astype(jnp.float32) * scale).astype(jnp.bfloat16),
            wk.astype(jnp.bfloat16),
            wv.astype(jnp.bfloat16))


def prepare_additive_mask(mask):
    """Turn a 0/1 mask into a 0 / -1e9 additive mask. Do once, not per call."""
    return jnp.where(mask == 0, NEG_INF, 0.0).astype(jnp.float32)


# =============================== wrapper ===============================

def head_forward(x, wq_s, wk_s, wv_s, add_mask=None, *, causal=False):
    """x: (B, T, C) f32; wq_s/wk_s/wv_s from prepare_head_weights;
    add_mask: optional (T, T) additive mask from prepare_additive_mask;
    causal=True generates a causal mask in-kernel (no mask input needed)."""
    B, T, C = x.shape
    hs = wq_s.shape[1]
    use_mask = add_mask is not None

    in_specs = [
        pl.BlockSpec((B, T, C), lambda i: (0, 0, 0)),   # whole activation
        pl.BlockSpec((C, hs), lambda i: (0, 0)),        # Wq (scale folded in)
        pl.BlockSpec((C, hs), lambda i: (0, 0)),        # Wk
        pl.BlockSpec((C, hs), lambda i: (0, 0)),        # Wv
    ]
    args = [x, wq_s, wk_s, wv_s]
    if use_mask:
        in_specs.append(pl.BlockSpec((T, T), lambda i: (0, 0)))
        args.append(add_mask)

    kern = functools.partial(_head_kernel, B=B, T=T, hs=hs,
                             use_mask=use_mask, causal=causal)

    return pl.pallas_call(
        kern,
        out_shape=jax.ShapeDtypeStruct((B, T, hs), x.dtype),
        grid=(1,),                                      # single step: no per-step pipeline overhead
        in_specs=in_specs,
        out_specs=pl.BlockSpec((B, T, hs), lambda i: (0, 0, 0)),
        compiler_params=pltpu.CompilerParams(
            vmem_limit_bytes=8 * 1024 * 1024),          # honest: working set << 1 MiB
    )(*args)


# =============================== reference (pure JAX) ===============================

def head_reference(x, wq, wk, wv, mask=None):
    C = x.shape[-1]
    q = x @ wq
    k = x @ wk
    v = x @ wv
    wei = jnp.einsum("btd,bsd->bts", q, k) * (C ** -0.5)
    if mask is not None:
        wei = jnp.where(mask == 0, -jnp.inf, wei)
    wei = jax.nn.softmax(wei, axis=-1)
    return wei @ v


# =============================== main ===============================

if __name__ == "__main__":
    key = jax.random.PRNGKey(0)
    kx, kq, kk, kv = jax.random.split(key, 4)

    B, T, C, hs = 2, 16, n_embd, head_size
    x = jax.random.normal(kx, (B, T, C), dtype=jnp.float32)
    wq = 0.05 * jax.random.normal(kq, (C, hs), dtype=jnp.float32)
    wk = 0.05 * jax.random.normal(kk, (C, hs), dtype=jnp.float32)
    wv = 0.05 * jax.random.normal(kv, (C, hs), dtype=jnp.float32)
    causal_mask = jnp.tril(jnp.ones((T, T), jnp.float32))

    # One-time (per-model) preparation — hoisted out of the forward pass.
    wq_s, wk_s, wv_s = prepare_head_weights(wq, wk, wv, C)
    add_mask = prepare_additive_mask(causal_mask)

    fwd = jax.jit(head_forward, static_argnames=("causal",))

    # causal mask generated in-kernel (no mask DMA)
    out_causal = jax.block_until_ready(fwd(x, wq_s, wk_s, wv_s, causal=True))
    # general (precomputed additive) mask path
    out_masked = jax.block_until_ready(fwd(x, wq_s, wk_s, wv_s, add_mask))
    # unmasked path
    out_plain = jax.block_until_ready(fwd(x, wq_s, wk_s, wv_s))

    ref_masked = head_reference(x, wq, wk, wv, causal_mask)
    ref_plain = head_reference(x, wq, wk, wv, None)

    assert out_causal.shape == (B, T, hs)
    assert out_masked.shape == (B, T, hs)
    assert out_plain.shape == (B, T, hs)
    for o in (out_causal, out_masked, out_plain):
        assert bool(jnp.all(jnp.isfinite(o)))
    assert bool(jnp.allclose(out_causal, ref_masked, rtol=2e-2, atol=2e-2))
    assert bool(jnp.allclose(out_masked, ref_masked, rtol=2e-2, atol=2e-2))
    assert bool(jnp.allclose(out_plain, ref_plain, rtol=2e-2, atol=2e-2))
    print("KERNEL_OK")
</pallas_src>

<mosaic_0001>
module attributes {stable_mosaic.version = 11 : i64} {
  func.func @_head_kernel(%arg0: i32, %arg1: memref<2x16x128xf32, #tpu.memory_space<vmem>>, %arg2: memref<128x32xbf16, #tpu.memory_space<vmem>>, %arg3: memref<128x32xbf16, #tpu.memory_space<vmem>>, %arg4: memref<128x32xbf16, #tpu.memory_space<vmem>>, %arg5: memref<2x16x32xf32, #tpu.memory_space<vmem>>) attributes {dimension_semantics = [#tpu.dimension_semantics<arbitrary>], iteration_bounds = array<i64: 1>, scalar_prefetch = 0 : i64, scratch_operands = 0 : i64, tpu.core_type = #tpu.core_type<tc>, window_params = [{pipeline_mode = #tpu.pipeline_mode<synchronous>, transform_indices = @transform_0, window_bounds = array<i64: 2, 16, 128>}, {pipeline_mode = #tpu.pipeline_mode<synchronous>, transform_indices = @transform_1, window_bounds = array<i64: 128, 32>}, {pipeline_mode = #tpu.pipeline_mode<synchronous>, transform_indices = @transform_2, window_bounds = array<i64: 128, 32>}, {pipeline_mode = #tpu.pipeline_mode<synchronous>, transform_indices = @transform_3, window_bounds = array<i64: 128, 32>}, {pipeline_mode = #tpu.pipeline_mode<synchronous>, transform_indices = @transform_4, window_bounds = array<i64: 2, 16, 32>}]} {
    %c0 = arith.constant 0 : index
    %c0_0 = arith.constant 0 : index
    %c0_1 = arith.constant 0 : index
    %0 = vector.load %arg1[%c0, %c0_0, %c0_1] : memref<2x16x128xf32, #tpu.memory_space<vmem>>, vector<2x16x128xf32>
    %1 = vector.shape_cast %0 : vector<2x16x128xf32> to vector<32x128xf32>
    %2 = arith.truncf %1 : vector<32x128xf32> to vector<32x128xbf16>
    %c0_2 = arith.constant 0 : index
    %c0_3 = arith.constant 0 : index
    %3 = vector.load %arg2[%c0_2, %c0_3] : memref<128x32xbf16, #tpu.memory_space<vmem>>, vector<128x32xbf16>
    %cst = arith.constant dense<0.000000e+00> : vector<32x32xf32>
    %4 = tpu.matmul %2, %3, %cst {dimension_numbers = #tpu.dot_dimension_numbers<[1], [0], [0], [1], [0, 0, 1, 1], [], []>} : vector<32x128xbf16>, vector<128x32xbf16>, vector<32x32xf32> -> vector<32x32xf32>
    %c0_4 = arith.constant 0 : index
    %c0_5 = arith.constant 0 : index
    %5 = vector.load %arg3[%c0_4, %c0_5] : memref<128x32xbf16, #tpu.memory_space<vmem>>, vector<128x32xbf16>
    %cst_6 = arith.constant dense<0.000000e+00> : vector<32x32xf32>
    %6 = tpu.matmul %2, %5, %cst_6 {dimension_numbers = #tpu.dot_dimension_numbers<[1], [0], [0], [1], [0, 0, 1, 1], [], []>} : vector<32x128xbf16>, vector<128x32xbf16>, vector<32x32xf32> -> vector<32x32xf32>
    %c0_7 = arith.constant 0 : index
    %c0_8 = arith.constant 0 : index
    %7 = vector.load %arg4[%c0_7, %c0_8] : memref<128x32xbf16, #tpu.memory_space<vmem>>, vector<128x32xbf16>
    %cst_9 = arith.constant dense<0.000000e+00> : vector<32x32xf32>
    %8 = tpu.matmul %2, %7, %cst_9 {dimension_numbers = #tpu.dot_dimension_numbers<[1], [0], [0], [1], [0, 0, 1, 1], [], []>} : vector<32x128xbf16>, vector<128x32xbf16>, vector<32x32xf32> -> vector<32x32xf32>
    %9 = vector.shape_cast %4 : vector<32x32xf32> to vector<2x16x32xf32>
    %10 = arith.truncf %9 : vector<2x16x32xf32> to vector<2x16x32xbf16>
    %11 = vector.shape_cast %6 : vector<32x32xf32> to vector<2x16x32xf32>
    %12 = arith.truncf %11 : vector<2x16x32xf32> to vector<2x16x32xbf16>
    %13 = vector.shape_cast %8 : vector<32x32xf32> to vector<2x16x32xf32>
    %14 = arith.truncf %13 : vector<2x16x32xf32> to vector<2x16x32xbf16>
    "tpu.trace_start"() <{level = 10 : i32, message = "bqh,bkh->bqk"}> : () -> ()
    %cst_10 = arith.constant dense<0.000000e+00> : vector<2x16x16xf32>
    %15 = tpu.matmul %10, %12, %cst_10 {dimension_numbers = #tpu.dot_dimension_numbers<[2], [2], [1], [1], [0, 0, 0, 1, 1, 1], [0], [0]>} : vector<2x16x32xbf16>, vector<2x16x32xbf16>, vector<2x16x16xf32> -> vector<2x16x16xf32>
    "tpu.trace_stop"() : () -> ()
    %16 = tpu.iota {dimensions = array<i32: 0>} : vector<16x16xi32>
    %17 = tpu.iota {dimensions = array<i32: 1>} : vector<16x16xi32>
    %18 = arith.cmpi sge, %16, %17 : vector<16x16xi32>
    %cst_11 = arith.constant 0.000000e+00 : f32
    %cst_12 = arith.constant -1.000000e+09 : f32
    %19 = vector.broadcast %cst_11 : f32 to vector<16x16xf32>
    %20 = vector.broadcast %cst_12 : f32 to vector<16x16xf32>
    %21 = arith.select %18, %19, %20 : vector<16x16xi1>, vector<16x16xf32>
    %22 = vector.shape_cast %21 : vector<16x16xf32> to vector<1x16x16xf32>
    %23 = vector.broadcast %22 : vector<1x16x16xf32> to vector<2x16x16xf32>
    %24 = arith.addf %15, %23 : vector<2x16x16xf32>
    %cst_13 = arith.constant dense<0xFF800000> : vector<2x16xf32>
    %25 = vector.multi_reduction <maximumf>, %24, %cst_13 [2] : vector<2x16x16xf32> to vector<2x16xf32>
    %26 = vector.shape_cast %25 : vector<2x16xf32> to vector<2x16x1xf32>
    %27 = vector.broadcast %26 : vector<2x16x1xf32> to vector<2x16x16xf32>
    %28 = arith.subf %24, %27 : vector<2x16x16xf32>
    %29 = math.exp %28 : vector<2x16x16xf32>
    %cst_14 = arith.constant dense<0.000000e+00> : vector<2x16xf32>
    %30 = vector.multi_reduction <add>, %29, %cst_14 [2] : vector<2x16x16xf32> to vector<2x16xf32>
    %31 = vector.shape_cast %30 : vector<2x16xf32> to vector<2x16x1xf32>
    %32 = tpu.reciprocal %31 {approx = true} : vector<2x16x1xf32> -> vector<2x16x1xf32>
    %33 = vector.broadcast %32 : vector<2x16x1xf32> to vector<2x16x16xf32>
    %34 = arith.mulf %29, %33 : vector<2x16x16xf32>
    %35 = arith.truncf %34 : vector<2x16x16xf32> to vector<2x16x16xbf16>
    "tpu.trace_start"() <{level = 10 : i32, message = "bqk,bkh->bqh"}> : () -> ()
    %cst_15 = arith.constant dense<0.000000e+00> : vector<2x16x32xf32>
    %36 = tpu.matmul %35, %14, %cst_15 {dimension_numbers = #tpu.dot_dimension_numbers<[2], [1], [1], [2], [0, 0, 0, 1, 1, 2], [0], [0]>} : vector<2x16x16xbf16>, vector<2x16x32xbf16>, vector<2x16x32xf32> -> vector<2x16x32xf32>
    "tpu.trace_stop"() : () -> ()
    %c0_16 = arith.constant 0 : index
    %c0_17 = arith.constant 0 : index
    %c0_18 = arith.constant 0 : index
    %37 = vector.load %arg5[%c0_16, %c0_17, %c0_18] : memref<2x16x32xf32, #tpu.memory_space<vmem>>, vector<2x16x32xf32>
    tpu.vector_store %arg5[%c0_16, %c0_17, %c0_18], %36 {strides = array<i32>} : memref<2x16x32xf32, #tpu.memory_space<vmem>>, vector<2x16x32xf32>,
    return
  }
  func.func @transform_0(%arg0: i32) -> (i32, i32, i32) {
    %c0_i32 = arith.constant 0 : i32
    %c0_i32_0 = arith.constant 0 : i32
    %c0_i32_1 = arith.constant 0 : i32
    %c0_i32_2 = arith.constant 0 : i32
    return %c0_i32, %c0_i32_0, %c0_i32_1 : i32, i32, i32
  }
  func.func @transform_1(%arg0: i32) -> (i32, i32) {
    %c0_i32 = arith.constant 0 : i32
    %c0_i32_0 = arith.constant 0 : i32
    %c0_i32_1 = arith.constant 0 : i32
    return %c0_i32, %c0_i32_0 : i32, i32
  }
  func.func @transform_2(%arg0: i32) -> (i32, i32) {
    %c0_i32 = arith.constant 0 : i32
    %c0_i32_0 = arith.constant 0 : i32
    %c0_i32_1 = arith.constant 0 : i32
    return %c0_i32, %c0_i32_0 : i32, i32
  }
  func.func @transform_3(%arg0: i32) -> (i32, i32) {
    %c0_i32 = arith.constant 0 : i32
    %c0_i32_0 = arith.constant 0 : i32
    %c0_i32_1 = arith.constant 0 : i32
    return %c0_i32, %c0_i32_0 : i32, i32
  }
  func.func @transform_4(%arg0: i32) -> (i32, i32, i32) {
    %c0_i32 = arith.constant 0 : i32
    %c0_i32_0 = arith.constant 0 : i32
    %c0_i32_1 = arith.constant 0 : i32
    %c0_i32_2 = arith.constant 0 : i32
    return %c0_i32, %c0_i32_0, %c0_i32_1 : i32, i32, i32
  }
}

</mosaic_0001>

<bundles_post_ra>
// kernel: head_forward.1
= control target key start
LH: loop header
LB: loop body
LE: loop exit
PB: predicated region body
PF: predicated region fallthrough
CT: control target
= control target key end

     0   :  { %s1006_s0 = inlined_call_operand.vmem [shape: f32[2,16,128], index: 0, kind: input, shape index: {}]   ;;  %s1007_s1 = inlined_call_operand.vmem [shape: bf16[128,32], index: 1, kind: input, shape index: {}]   ;;  %s1008_s2 = inlined_call_operand.vmem [shape: bf16[128,32], index: 2, kind: input, shape index: {}]   ;;  %s1009_s3 = inlined_call_operand.vmem [shape: bf16[128,32], index: 3, kind: input, shape index: {}]   ;;  %s1010_s4 = inlined_call_operand.hbm [shape: f32[2,16,32], index: 4, kind: output, shape index: {}]  }
   0x1   :  { %v785_v0 = vld [vmem:[%s1008_s2] sm:$0xff]   ;;  %v786_v1 = vld [vmem:[%s1008_s2 + $0x8] sm:$0xff]   ;;  %v788_v3 = vld [vmem:[%s1008_s2 + $0x10] sm:$0xff]  }
   0x2   :  { %715 = vmatprep.subr.bf16.mxu1 %v785_v0  ;;  %v787_v2 = vld [vmem:[%s1007_s1] sm:$0xff]   ;;  %v789_v4 = vld [vmem:[%s1007_s1 + $0x8] sm:$0xff]   ;;  %v791_v5 = vld [vmem:[%s1007_s1 + $0x10] sm:$0xff]  }
   0x3   :  { %716 = vmatpush3.bf16.msra.mxu1 %v785_v0  ;;  %695 = vmatprep.subr.bf16.mxu0 %v787_v2  ;;  %v790_v6 = vld [vmem:[%s1008_s2 + $0x18] sm:$0xff]   ;;  %v792_v8 = vld [vmem:[%s1008_s2 + $0x20] sm:$0xff]   ;;  %v20_v11 = vld [vmem:[%s1006_s0 + $0x8] sm:$0xff] }
   0x4   :  { %717 = vmatprep.subr.bf16.mxu1 %v786_v1  ;;  %696 = vmatpush3.bf16.msra.mxu0 %v787_v2  ;;  %v793_v7 = vld [vmem:[%s1007_s1 + $0x18] sm:$0xff]   ;;  %v795_v9 = vld [vmem:[%s1007_s1 + $0x20] sm:$0xff]   ;;  %v794_v12 = vld [vmem:[%s1008_s2 + $0x28] sm:$0xff]  }
   0x5   :  { %697 = vmatprep.subr.bf16.mxu0 %v789_v4  ;;  %v19_v10 = vld [vmem:[%s1006_s0] sm:$0xff]  ;;  %v797_v14 = vld [vmem:[%s1007_s1 + $0x28] sm:$0xff]   ;;  %v796_v15 = vld [vmem:[%s1008_s2 + $0x30] sm:$0xff]  }
   0x6   :  { %v23_v13 = vpack.c.bf16 %v20_v11, %v19_v10  ;;  %v799_v16 = vld [vmem:[%s1007_s1 + $0x30] sm:$0xff]  }
   0x7   :  { %718 = vmatpush3.bf16.msra.mxu1 %v786_v1 }
   0x8   :  { %719 = vmatprep.subr.bf16.mxu1 %v788_v3  ;;  %698 = vmatpush3.bf16.msra.mxu0 %v789_v4 }
   0x9   :  { %699 = vmatprep.subr.bf16.mxu0 %v791_v5  ;;  %731 = vmatprep.mubr.bf16.mxu1 %v23_v13 }
   0xa   :  { %711 = vmatprep.mubr.bf16.mxu0 %v23_v13 }
   0xb   :  { %720 = vmatpush3.bf16.msra.mxu1 %v788_v3 }
   0xc   :  { %721 = vmatprep.subr.bf16.mxu1 %v790_v6  ;;  %700 = vmatpush3.bf16.msra.mxu0 %v791_v5 }
   0xd   :  { %701 = vmatprep.subr.bf16.mxu0 %v793_v7 }
   0xf   :  { %722 = vmatpush3.bf16.msra.mxu1 %v790_v6 }
  0x10   :  { %723 = vmatprep.subr.bf16.mxu1 %v792_v8  ;;  %702 = vmatpush3.bf16.msra.mxu0 %v793_v7 }
  0x11   :  { %703 = vmatprep.subr.bf16.mxu0 %v795_v9 }
  0x13   :  { %724 = vmatpush3.bf16.msra.mxu1 %v792_v8 }
  0x14   :  { %725 = vmatprep.subr.bf16.mxu1 %v794_v12  ;;  %704 = vmatpush3.bf16.msra.mxu0 %v795_v9 }
  0x15   :  { %705 = vmatprep.subr.bf16.mxu0 %v797_v14 }
  0x16   :  { %9 = vsyncpa [#allocation3], 0  ;;  %v798_v17 = vld [vmem:[%s1008_s2 + $0x38] sm:$0xff]   ;;  %v21_v19 = vld [vmem:[%s1006_s0 + $0x10] sm:$0xff]  ;;  %v849_v22 = vmov 0.0   ;;  %vm850_vm0 = vmmov 0   ;;  %v370_v45 = vlaneseq }
  0x17   :  { %726 = vmatpush3.bf16.msra.mxu1 %v794_v12  ;;  %v800_v18 = vld [vmem:[%s1007_s1 + $0x38] sm:$0xff]   ;;  %vm379_vm1 = vcmask 261120   ;;  %v801_v37 = vld [vmem:[%s1009_s3] sm:$0xff]   ;;  %v802_v38 = vld [vmem:[%s1009_s3 + $0x8] sm:$0xff]   ;;  %v851_v49 = vmov -1e+09  }
  0x18   :  { %727 = vmatprep.subr.bf16.mxu1 %v796_v15  ;;  %706 = vmatpush3.bf16.msra.mxu0 %v797_v14  ;;  %v22_v20 = vld [vmem:[%s1006_s0 + $0x18] sm:$0xff]  ;;  %v803_v39 = vld [vmem:[%s1009_s3 + $0x10] sm:$0xff]   ;;  %v805_v41 = vld [vmem:[%s1009_s3 + $0x20] sm:$0xff]   ;;  %v371_v46 = vshrl.u32 %v370_v45, 7  ;;  %v374_v47 = vand.u32 127, %v370_v45  ;;  %vm474_vm4 = vcmask 130048  }
  0x19   :  { %707 = vmatprep.subr.bf16.mxu0 %v799_v16  ;;  %v24_v21 = vpack.c.bf16 %v22_v20, %v21_v19  ;;  %v804_v40 = vld [vmem:[%s1009_s3 + $0x18] sm:$0xff]   ;;  %v806_v42 = vld [vmem:[%s1009_s3 + $0x28] sm:$0xff]   ;;  %v807_v43 = vld [vmem:[%s1009_s3 + $0x30] sm:$0xff]  }
  0x1a   :  { %v808_v44 = vld [vmem:[%s1009_s3 + $0x38] sm:$0xff]   ;;  %v372_v48 = vadd.s32 8, %v371_v46  ;;  %vm375_vm2 = vcmp.ge.s32.totalorder %v371_v46, %v374_v47  ;;  %s852_s3 = smov [#allocation2]  }
  0x1b   :  { %728 = vmatpush3.bf16.msra.mxu1 %v796_v15  ;;  %v377_v50 = vsel %vm375_vm2, 0.0, %v851_v49  ;;  %s618_s16 = sshll.u32 %s852_s3, 4  ;;  %s619_s16 = int_to_ptr.vmem [resolvable:$true] %s618_s16 }
  0x1c   :  { %729 = vmatprep.subr.bf16.mxu1 %v798_v17  ;;  %708 = vmatpush3.bf16.msra.mxu0 %v799_v16  ;;  %vm376_vm3 = vcmp.ge.s32.totalorder %v372_v48, %v374_v47  ;;  %s825_s17 = scalar_lea.vmem %s619_s16, 512  ;;  %p830_p1 = scmp.lt.s32.totalorder %s619_s16, %s619_s16 }
  0x1d   :  { %709 = vmatprep.subr.bf16.mxu0 %v800_v18  ;;  %v378_v52 = vsel %vm376_vm3, 0.0, %v851_v49  ;;  %p826_p0 = scmp.ne.s32.totalorder %s619_s16, %s825_s17  ;;  %p831_p2 = scmp.lt.s32.totalorder %s825_s17, %s825_s17 }
  0x1f   :  { %730 = vmatpush3.bf16.msra.mxu1 %v798_v17  ;;  %p832_p3 = por %p831_p2, %p830_p1 }
  0x20   :  { %710 = vmatpush3.bf16.msra.mxu0 %v800_v18  ;;  %755 = vmatprep.subr.bf16.mxu1 %v849_v22 }
  0x21   :  { %735 = vmatprep.subr.bf16.mxu0 %v801_v37  ;;  %p833_p4 = pnand %p832_p3, %p826_p0 }
  0x22   :  { %732 = vmatmul.mubr.bf16.vlgmr.msra.gmra.mrb[0].mxu1 %v24_v21 }
  0x23   :  { %712 = vmatmul.mubr.bf16.vlgmr.msra.gmra.mrb[0].mxu0 %v24_v21  ;;  %757 = vmatprep.mubr.msk.bf16.mxu1 %vm850_vm0, %v849_v22 }
  0x24   :  { %751 = vmatprep.mubr.bf16.mxu0 %v23_v13  ;;  %736 = vmatpush3.bf16.msra.mxu0 %v801_v37 }
  0x25   :  { %737 = vmatprep.subr.bf16.mxu0 %v802_v38 }
  0x28   :  { %738 = vmatpush3.bf16.msra.mxu0 %v802_v38 }
  0x29   :  { %739 = vmatprep.subr.bf16.mxu0 %v803_v39 }
  0x2c   :  { %740 = vmatpush3.bf16.msra.mxu0 %v803_v39 }
  0x2d   :  { %741 = vmatprep.subr.bf16.mxu0 %v804_v40 }
  0x30   :  { %742 = vmatpush3.bf16.msra.mxu0 %v804_v40 }
  0x31   :  { %743 = vmatprep.subr.bf16.mxu0 %v805_v41 }
  0x34   :  { %744 = vmatpush3.bf16.msra.mxu0 %v805_v41 }
  0x35   :  { %745 = vmatprep.subr.bf16.mxu0 %v806_v42 }
  0x38   :  { %746 = vmatpush3.bf16.msra.mxu0 %v806_v42 }
  0x39   :  { %747 = vmatprep.subr.bf16.mxu0 %v807_v43 }
  0x3c   :  { %748 = vmatpush3.bf16.msra.mxu0 %v807_v43 }
  0x3d   :  { %749 = vmatprep.subr.bf16.mxu0 %v808_v44 }
  0x40   :  { %750 = vmatpush3.bf16.msra.mxu0 %v808_v44 }
  0x43   :  { %752 = vmatmul.mubr.bf16.vlgmr.msra.gmra.mrb[4].mxu0 %v24_v21 }
  0xf5   :  { %v733_v23 = vpop.f32.mrb[0].mxu1 }
  0xf6   :  { %v236_v24 = vpop.f32.mrb[1].mxu1  ;;  %v713_v26 = vpop.f32.mrb[0].mxu0 }
  0xf7   :  { %v734_v25 = vpop.f32.mrb[2].mxu1  ;;  %v123_v29 = vpop.f32.mrb[1].mxu0 }
  0xf8   :  { %v367_v27 = vpack.c.bf16 %v734_v25, %v733_v23  ;;  %v239_v28 = vpop.f32.mrb[3].mxu1  ;;  %v714_v31 = vpop.f32.mrb[2].mxu0 }
  0xf9   :  { %v366_v30 = vpack.c.bf16 %v239_v28, %v236_v24  ;;  %v365_v32 = vpack.c.bf16 %v714_v31, %v713_v26  ;;  %v126_v33 = vpop.f32.mrb[3].mxu0 }
  0xfa   :  { %v364_v35 = vpack.c.bf16 %v126_v33, %v123_v29  ;;  %v431_v36 = vsel %vm379_vm1, %v367_v27, 0 }
  0xfb   :  { %v384_v34 = vsel %vm379_vm1, %v366_v30, 0 }
  0xfc   :  { %756 = vmatpush3.bf16.xpose.msra.mxu1 %v384_v34 }
  0xfd   :  { %761 = vmatprep.subr.bf16.mxu1 %v849_v22 }
 0x103   :  { %758 = vmatmul.mubr.msk.bf16.vlgmr.msra.gmra.mrb[4].mxu1 %vm379_vm1, %v364_v35 }
 0x104   :  { %762 = vmatpush3.bf16.xpose.msra.mxu1 %v431_v36  ;;  %763 = vmatprep.mubr.msk.bf16.mxu1 %vm850_vm0, %v849_v22 }
 0x105   :  { %767 = vmatprep.subr.bf16.mxu1 %v849_v22 }
 0x10b   :  { %764 = vmatmul.mubr.msk.bf16.vlgmr.msra.gmra.mrb[8].mxu1 %vm379_vm1, %v365_v32 }
 0x10c   :  { %769 = vmatprep.mubr.msk.bf16.mxu1 %vm850_vm0, %v849_v22 }
 0x116   :  { %v753_v25 = vpop.f32.mrb[4].mxu0 }
 0x117   :  { %v349_v26 = vpop.f32.mrb[5].mxu0 }
 0x118   :  { %v754_v27 = vpop.f32.mrb[6].mxu0 }
 0x119   :  { %v352_v28 = vpop.f32.mrb[7].mxu0  ;;  %v369_v29 = vpack.c.bf16 %v754_v27, %v753_v25 }
 0x11a   :  { %v368_v30 = vpack.c.bf16 %v352_v28, %v349_v26 }
 0x11c   :  { %768 = vmatpush3.bf16.msra.mxu1 %v368_v30 }
 0x11d   :  { %773 = vmatprep.subr.bf16.mxu1 %v849_v22 }
 0x1d6   :  { %v420_v51 = vpop.f32.mrb[4].mxu1 }
 0x1d7   :  { %v421_v53 = vadd.f32 %v420_v51, %v377_v50  ;;  %v759_v54 = vpop.f32.mrb[5].mxu1 }
 0x1d8   :  { %v423_v55 = vpop.f32.mrb[6].mxu1 }
 0x1d9   :  { %v424_v56 = vadd.f32 %v423_v55, %v378_v52  ;;  %v760_v57 = vpop.f32.mrb[7].mxu1  ;;  %v475_v58 = vsel %vm474_vm4, %v421_v53, -inf }
 0x1da   :  { %476 = vmax.xlane.f32.xlu0 %v475_v58 }
 0x1db   :  { %v478_v59 = vsel %vm474_vm4, %v424_v56, -inf }
 0x1de   :  { %479 = vmax.xlane.f32.xlu0 %v478_v59  ;;  %v467_v60 = vpop.f32.mrb[8].mxu1 }
 0x1df   :  { %v468_v61 = vadd.f32 %v467_v60, %v377_v50  ;;  %v765_v62 = vpop.f32.mrb[9].mxu1 }
 0x1e0   :  { %v470_v63 = vpop.f32.mrb[10].mxu1 }
 0x1e1   :  { %v471_v0 = vadd.f32 %v470_v63, %v378_v52  ;;  %v766_v1 = vpop.f32.mrb[11].mxu1  ;;  %v481_v2 = vsel %vm474_vm4, %v468_v61, -inf }
 0x1e2   :  { %482 = vmax.xlane.f32.xlu1 %v481_v2 }
 0x1e3   :  { %v484_v3 = vsel %vm474_vm4, %v471_v0, -inf }
 0x1e6   :  { %485 = vmax.xlane.f32.xlu1 %v484_v3 }
 0x267   :  { %v477_v4 = vpop.xlane.xlu0 %476 }
 0x268   :  { %v487_v5 = vsub.f32 %v421_v53, %v477_v4 }
 0x26a   :  { %v491_v6 = vmul.f32 1.442695, %v487_v5 }
 0x26b   :  { %v480_v7 = vpop.xlane.xlu0 %479 }
 0x26c   :  { %809 = vpow2.f32 %v491_v6  ;;  %v488_v8 = vsub.f32 %v424_v56, %v480_v7 }
 0x26e   :  { %v493_v9 = vmul.f32 1.442695, %v488_v8 }
 0x26f   :  { %v483_v10 = vpop.xlane.xlu1 %482 }
 0x270   :  { %811 = vpow2.f32 %v493_v9  ;;  %v489_v11 = vsub.f32 %v468_v61, %v483_v10 }
 0x272   :  { %v495_v12 = vmul.f32 1.442695, %v489_v11 }
 0x273   :  { %v486_v13 = vpop.xlane.xlu1 %485 }
 0x274   :  { %813 = vpow2.f32 %v495_v12  ;;  %v490_v14 = vsub.f32 %v471_v0, %v486_v13 }
 0x276   :  { %v810_v15 = vpop.eup %809  ;;  %v497_v16 = vmul.f32 1.442695, %v490_v14 }
 0x277   :  { %v499_v17 = vsel %vm474_vm4, %v810_v15, 0.0 }
 0x278   :  { %815 = vpow2.f32 %v497_v16  ;;  %500 = vadd.xlane.f32.xlu0 %v499_v17 }
 0x27a   :  { %v812_v18 = vpop.eup %811 }
 0x27b   :  { %v502_v19 = vsel %vm474_vm4, %v812_v18, 0.0 }
 0x27c   :  { %503 = vadd.xlane.f32.xlu1 %v502_v19 }
 0x27e   :  { %v814_v20 = vpop.eup %813 }
 0x27f   :  { %v505_v21 = vsel %vm474_vm4, %v814_v20, 0.0 }
 0x280   :  { %506 = vadd.xlane.f32.xlu0 %v505_v21 }
 0x282   :  { %v816_v23 = vpop.eup %815 }
 0x283   :  { %v508_v24 = vsel %vm474_vm4, %v816_v23, 0.0 }
 0x284   :  { %509 = vadd.xlane.f32.xlu1 %v508_v24 }
 0x305   :  { %v501_v31 = vpop.xlane.xlu0 %500 }
 0x306   :  { %817 = vrcp.f32 %v501_v31 }
 0x309   :  { %v504_v32 = vpop.xlane.xlu1 %503 }
 0x30a   :  { %819 = vrcp.f32 %v504_v32 }
 0x30d   :  { %v507_v33 = vpop.xlane.xlu0 %506 }
 0x30e   :  { %821 = vrcp.f32 %v507_v33 }
 0x310   :  { %v818_v35 = vpop.eup %817 }
 0x311   :  { %v510_v34 = vpop.xlane.xlu1 %509  ;;  %v515_v37 = vmul.f32 %v818_v35, %v810_v15 }
 0x312   :  { %823 = vrcp.f32 %v510_v34 }
 0x314   :  { %v820_v36 = vpop.eup %819 }
 0x315   :  { %v516_v38 = vmul.f32 %v820_v36, %v812_v18 }
 0x317   :  { %v519_v39 = vpack.c.bf16 %v516_v38, %v515_v37 }
 0x318   :  { %v822_v40 = vpop.eup %821 }
 0x319   :  { %770 = vmatmul.mubr.msk.bf16.vlgmr.msra.gmra.mrb[12].mxu1 %vm474_vm4, %v519_v39  ;;  %v517_v42 = vmul.f32 %v822_v40, %v814_v20 }
 0x31a   :  { %774 = vmatpush3.bf16.msra.mxu1 %v369_v29  ;;  %775 = vmatprep.mubr.msk.bf16.mxu1 %vm850_vm0, %v849_v22 }
 0x31c   :  { %v824_v41 = vpop.eup %823 }
 0x31d   :  { %v518_v43 = vmul.f32 %v824_v41, %v816_v23 }
 0x31f   :  { %v520_v44 = vpack.c.bf16 %v518_v43, %v517_v42 }
 0x321   :  { %776 = vmatmul.mubr.msk.bf16.vlgmr.msra.gmra.mrb[16].mxu1 %vm474_vm4, %v520_v44 }
 0x3ec   :  { %v558_v45 = vpop.f32.mrb[12].mxu1 }
 0x3ed   :  { %609 = vst.msk [vmem:[#allocation2] sm:$0xff] %vm379_vm1, %v558_v45  ;;  %v771_v46 = vpop.f32.mrb[13].mxu1 }
 0x3ee   :  { %v561_v47 = vpop.f32.mrb[14].mxu1 }
 0x3ef   :  { %610 = vst.msk [vmem:[#allocation2 + $0x8] sm:$0xff] %vm379_vm1, %v561_v47  ;;  %v772_v48 = vpop.f32.mrb[15].mxu1 }
 0x3f4   :  { %v602_v49 = vpop.f32.mrb[16].mxu1 }
 0x3f5   :  { %611 = vst.msk [vmem:[#allocation2 + $0x10] sm:$0xff] %vm379_vm1, %v602_v49  ;;  %v777_v22 = vpop.f32.mrb[17].mxu1 }
 0x3f6   :  { %v605_v50 = vpop.f32.mrb[18].mxu1 }
 0x3f7   :  { %612 = vst.msk [vmem:[#allocation2 + $0x18] sm:$0xff] %vm379_vm1, %v605_v50  ;;  %v778_v51 = vpop.f32.mrb[19].mxu1 }
 0x3f8   :  { %836 = shalt.err (!%p833_p4)
}
 0x3f9   :  { %s837_s20 = scalar_lea.hbm %s1010_s4, 512 }
 0x3fa   :  { %p838_p5 = scmp.ne.s32.totalorder %s1010_s4, %s837_s20  ;;  %p841_p6 = scmp.lt.u32.totalorder %s837_s20, %s1010_s4 }
 0x3fc   :  { %p843_p7 = pnand %p841_p6, %p838_p5 }
 0x3fe   :  { %846 = shalt.err (!%p843_p7)
}
 0x3ff   :  { %s853_s25 = smov 128   ;;  %s854_s26 = smov 8  }
 0x400   :  { %624 = dma.vmem_to_hbm [thread:$0]  %s619_s16, 512, %s1010_s4, [#allocation3], %s853_s25, %s853_s25, %s854_s26  }
 0x401   :  { %847 = dma.done.wait [#allocation3], 512  }
 0x402   :  { %848 = vsyncadd [#allocation3], 4294966784 }
 0x403   :  { %628 = vsyncpa [#allocation3], 1 }

</bundles_post_ra>
